<compile_context>
chip_gen: v6e
topology: v6e:2x2x1
jax: 0.10.0
libtpu: 0.0.40
codegen_flags: <defaults>
</compile_context>

<pallas_src>
import math

import jax
import jax.numpy as jnp
from jax import lax
from jax.experimental import pallas as pl
from jax.experimental.pallas import tpu as pltpu


def _round_up(n, m):
    return ((n + m - 1) // m) * m


def mlp_critic_kernel(x_ref, w1_ref, b1_ref, w2_ref, b2_ref, w3_ref, b3_ref,
                      o_ref):
    # x_ref: [tile_b, obs] f32.  Cast to bf16 here (VPU work, hidden under DMA).
    x = x_ref[...].astype(jnp.bfloat16)

    # Layer 1: W1[h1,obs] . X[tile_b,obs]^T -> [h1, tile_b], f32 accumulate.
    h = lax.dot_general(w1_ref[...], x, (((1,), (1,)), ((), ())),
                        preferred_element_type=jnp.float32)
    h = jnp.tanh(h + b1_ref[...])

    # Layer 2: W2[h2,h1] . H[h1,tile_b] -> [h2, tile_b].
    h = jnp.dot(w2_ref[...], h.astype(jnp.bfloat16),
                preferred_element_type=jnp.float32)
    h = jnp.tanh(h + b2_ref[...])

    # Output layer (Identity activation): W3[action_dim,h2] . H -> [action_dim, tile_b].
    # Kept in f32 (tiny) and stored lane-dense.
    v = jnp.dot(w3_ref[...], h, preferred_element_type=jnp.float32)
    o_ref[...] = (v + b3_ref[...]).astype(o_ref.dtype)


def mlp_critic_forward(x, params, tile_b=4096):
    """x: [B, obs_dim] f32.  params: [(W,b), ...] in PyTorch layout W[out,in], b[out]."""
    (w1, b1), (w2, b2), (w3, b3) = params
    B, obs_dim = x.shape
    h1 = w1.shape[0]
    h2 = w2.shape[0]
    action_dim = w3.shape[0]

    # Tile selection: single full block for small batches, else 128-lane-aligned
    # tiles with a masked partial final block (no wrapper-side padding pass).
    if B <= tile_b:
        tile_b = B
    else:
        tile_b = _round_up(max(tile_b, 128), 128)
    grid = (pl.cdiv(B, tile_b),)

    # Tiny one-time prep (weights are VMEM-resident via constant index_maps).
    w1b = w1.astype(jnp.bfloat16)                    # [h1, obs]
    w2b = w2.astype(jnp.bfloat16)                    # [h2, h1]
    b1c = b1.reshape(h1, 1)                          # per-feature bias -> sublanes
    b2c = b2.reshape(h2, 1)
    b3c = b3.reshape(action_dim, 1)

    cost = pl.CostEstimate(
        flops=2 * B * (obs_dim * h1 + h1 * h2 + h2 * action_dim),
        transcendentals=B * (h1 + h2),
        bytes_accessed=(x.size * 4 + B * action_dim * 4
                        + (w1b.size + w2b.size) * 2
                        + (b1.size + b2.size + w3.size + b3.size) * 4))

    const = lambda i: (0, 0)  # weights/biases: same block every grid step
    out = pl.pallas_call(
        mlp_critic_kernel,
        out_shape=jax.ShapeDtypeStruct((action_dim, B), jnp.float32),
        grid=grid,
        in_specs=[
            pl.BlockSpec((tile_b, obs_dim), lambda i: (i, 0)),   # x tile (f32)
            pl.BlockSpec((h1, obs_dim), const),                  # W1 (bf16)
            pl.BlockSpec((h1, 1), const),                        # b1
            pl.BlockSpec((h2, h1), const),                       # W2 (bf16)
            pl.BlockSpec((h2, 1), const),                        # b2
            pl.BlockSpec((action_dim, h2), const),               # W3 (f32)
            pl.BlockSpec((action_dim, 1), const),                # b3
        ],
        out_specs=pl.BlockSpec((action_dim, tile_b), lambda i: (0, i)),
        compiler_params=pltpu.CompilerParams(
            dimension_semantics=("parallel",),
            vmem_limit_bytes=32 * 1024 * 1024),
        cost_estimate=cost,
    )(x, w1b, b1c, w2b, b2c, w3, b3c)

    # Lane-dense [action_dim, B] -> module's [B, action_dim] (cheap; for
    # action_dim == 1 this is just a reshape).
    return jnp.transpose(out)


def init_linear(key, in_features, out_features):
    """Deterministic init mimicking torch.nn.Linear (uniform +-1/sqrt(fan_in)),
    stored in PyTorch-native layout: W [out, in], b [out]."""
    kw, kb = jax.random.split(key)
    bound = 1.0 / math.sqrt(in_features)
    w = jax.random.uniform(kw, (out_features, in_features), jnp.float32,
                           minval=-bound, maxval=bound)
    b = jax.random.uniform(kb, (out_features,), jnp.float32,
                           minval=-bound, maxval=bound)
    return w, b


def reference_forward(x, params):
    """Pure-JAX reference matching the kernel's bf16 matmul inputs / f32 accumulate."""
    (w1, b1), (w2, b2), (w3, b3) = params
    xb = x.astype(jnp.bfloat16).astype(jnp.float32)
    w1f = w1.astype(jnp.bfloat16).astype(jnp.float32)
    w2f = w2.astype(jnp.bfloat16).astype(jnp.float32)
    h = jnp.tanh(xb @ w1f.T + b1)
    h = h.astype(jnp.bfloat16).astype(jnp.float32)
    h = jnp.tanh(h @ w2f.T + b2)
    return h @ w3.T + b3


if __name__ == "__main__":
    # Small shapes consistent with an MLP critic.
    obs_dim = 16
    hidden_sizes = (32, 32)
    action_dim = 1

    key = jax.random.PRNGKey(0)
    k_x, k1, k2, k3, k_x2 = jax.random.split(key, 5)

    params = [
        init_linear(k1, obs_dim, hidden_sizes[0]),
        init_linear(k2, hidden_sizes[0], hidden_sizes[1]),
        init_linear(k3, hidden_sizes[1], action_dim),
    ]

    # Case 1: tiny batch -> single full-array block (exact block = array dims).
    batch = 4
    x = jax.random.normal(k_x, (batch, obs_dim), jnp.float32)
    out = jax.block_until_ready(mlp_critic_forward(x, params))
    ref = reference_forward(x, params)
    assert out.shape == (batch, action_dim)
    assert jnp.allclose(out, ref, atol=1e-3, rtol=1e-3)

    # Case 2: batch not a multiple of the tile -> exercises the cdiv grid and the
    # masked partial final block (no wrapper pad/cast passes over x).
    batch2 = 300
    x2 = jax.random.normal(k_x2, (batch2, obs_dim), jnp.float32)
    out2 = jax.block_until_ready(mlp_critic_forward(x2, params, tile_b=128))
    ref2 = reference_forward(x2, params)
    assert out2.shape == (batch2, action_dim)
    assert jnp.allclose(out2, ref2, atol=1e-3, rtol=1e-3)

    print("KERNEL_OK")
</pallas_src>

<mosaic_0001>
module attributes {stable_mosaic.version = 11 : i64} {
  func.func @mlp_critic_kernel(%arg0: i32, %arg1: memref<4x16xf32, #tpu.memory_space<vmem>>, %arg2: memref<32x16xbf16, #tpu.memory_space<vmem>>, %arg3: memref<32x1xf32, #tpu.memory_space<vmem>>, %arg4: memref<32x32xbf16, #tpu.memory_space<vmem>>, %arg5: memref<32x1xf32, #tpu.memory_space<vmem>>, %arg6: memref<1x32xf32, #tpu.memory_space<vmem>>, %arg7: memref<1x1xf32, #tpu.memory_space<vmem>>, %arg8: memref<1x4xf32, #tpu.memory_space<vmem>>) attributes {dimension_semantics = [#tpu.dimension_semantics<parallel>], iteration_bounds = array<i64: 1>, scalar_prefetch = 0 : i64, scratch_operands = 0 : i64, tpu.core_type = #tpu.core_type<tc>, window_params = [{transform_indices = @transform_0, window_bounds = array<i64: 4, 16>}, {pipeline_mode = #tpu.pipeline_mode<synchronous>, transform_indices = @transform_1, window_bounds = array<i64: 32, 16>}, {pipeline_mode = #tpu.pipeline_mode<synchronous>, transform_indices = @transform_2, window_bounds = array<i64: 32, 1>}, {pipeline_mode = #tpu.pipeline_mode<synchronous>, transform_indices = @transform_3, window_bounds = array<i64: 32, 32>}, {pipeline_mode = #tpu.pipeline_mode<synchronous>, transform_indices = @transform_4, window_bounds = array<i64: 32, 1>}, {pipeline_mode = #tpu.pipeline_mode<synchronous>, transform_indices = @transform_5, window_bounds = array<i64: 1, 32>}, {pipeline_mode = #tpu.pipeline_mode<synchronous>, transform_indices = @transform_6, window_bounds = array<i64: 1, 1>}, {transform_indices = @transform_7, window_bounds = array<i64: 1, 4>}]} {
    %c0 = arith.constant 0 : index
    %c0_0 = arith.constant 0 : index
    %0 = vector.load %arg1[%c0, %c0_0] : memref<4x16xf32, #tpu.memory_space<vmem>>, vector<4x16xf32>
    %1 = arith.truncf %0 : vector<4x16xf32> to vector<4x16xbf16>
    %c0_1 = arith.constant 0 : index
    %c0_2 = arith.constant 0 : index
    %2 = vector.load %arg2[%c0_1, %c0_2] : memref<32x16xbf16, #tpu.memory_space<vmem>>, vector<32x16xbf16>
    %cst = arith.constant dense<0.000000e+00> : vector<32x4xf32>
    %3 = tpu.matmul %2, %1, %cst {dimension_numbers = #tpu.dot_dimension_numbers<[1], [1], [0], [0], [0, 0, 1, 0], [], []>} : vector<32x16xbf16>, vector<4x16xbf16>, vector<32x4xf32> -> vector<32x4xf32>
    %c0_3 = arith.constant 0 : index
    %c0_4 = arith.constant 0 : index
    %4 = vector.load %arg3[%c0_3, %c0_4] : memref<32x1xf32, #tpu.memory_space<vmem>>, vector<32x1xf32>
    %5 = vector.broadcast %4 : vector<32x1xf32> to vector<32x4xf32>
    %6 = arith.addf %3, %5 : vector<32x4xf32>
    %7 = math.tanh %6 : vector<32x4xf32>
    %c0_5 = arith.constant 0 : index
    %c0_6 = arith.constant 0 : index
    %8 = vector.load %arg4[%c0_5, %c0_6] : memref<32x32xbf16, #tpu.memory_space<vmem>>, vector<32x32xbf16>
    %9 = arith.truncf %7 : vector<32x4xf32> to vector<32x4xbf16>
    %cst_7 = arith.constant dense<0.000000e+00> : vector<32x4xf32>
    %10 = tpu.matmul %8, %9, %cst_7 {dimension_numbers = #tpu.dot_dimension_numbers<[1], [0], [0], [1], [0, 0, 1, 1], [], []>} : vector<32x32xbf16>, vector<32x4xbf16>, vector<32x4xf32> -> vector<32x4xf32>
    %c0_8 = arith.constant 0 : index
    %c0_9 = arith.constant 0 : index
    %11 = vector.load %arg5[%c0_8, %c0_9] : memref<32x1xf32, #tpu.memory_space<vmem>>, vector<32x1xf32>
    %12 = vector.broadcast %11 : vector<32x1xf32> to vector<32x4xf32>
    %13 = arith.addf %10, %12 : vector<32x4xf32>
    %14 = math.tanh %13 : vector<32x4xf32>
    %c0_10 = arith.constant 0 : index
    %c0_11 = arith.constant 0 : index
    %15 = vector.load %arg6[%c0_10, %c0_11] : memref<1x32xf32, #tpu.memory_space<vmem>>, vector<1x32xf32>
    %cst_12 = arith.constant dense<0.000000e+00> : vector<1x4xf32>
    %16 = tpu.matmul %15, %14, %cst_12 {dimension_numbers = #tpu.dot_dimension_numbers<[1], [0], [0], [1], [0, 0, 1, 1], [], []>} : vector<1x32xf32>, vector<32x4xf32>, vector<1x4xf32> -> vector<1x4xf32>
    %c0_13 = arith.constant 0 : index
    %c0_14 = arith.constant 0 : index
    %17 = vector.load %arg7[%c0_13, %c0_14] : memref<1x1xf32, #tpu.memory_space<vmem>>, vector<1x1xf32>
    %18 = vector.broadcast %17 : vector<1x1xf32> to vector<1x4xf32>
    %19 = arith.addf %16, %18 : vector<1x4xf32>
    %c0_15 = arith.constant 0 : index
    %c0_16 = arith.constant 0 : index
    %20 = vector.load %arg8[%c0_15, %c0_16] : memref<1x4xf32, #tpu.memory_space<vmem>>, vector<1x4xf32>
    tpu.vector_store %arg8[%c0_15, %c0_16], %19 {strides = array<i32>} : memref<1x4xf32, #tpu.memory_space<vmem>>, vector<1x4xf32>,
    return
  }
  func.func @transform_0(%arg0: i32) -> (i32, i32) {
    %c0_i32 = arith.constant 0 : i32
    %c0_i32_0 = arith.constant 0 : i32
    return %arg0, %c0_i32 : i32, i32
  }
  func.func @transform_1(%arg0: i32) -> (i32, i32) {
    %c0_i32 = arith.constant 0 : i32
    %c0_i32_0 = arith.constant 0 : i32
    %c0_i32_1 = arith.constant 0 : i32
    return %c0_i32, %c0_i32_0 : i32, i32
  }
  func.func @transform_2(%arg0: i32) -> (i32, i32) {
    %c0_i32 = arith.constant 0 : i32
    %c0_i32_0 = arith.constant 0 : i32
    %c0_i32_1 = arith.constant 0 : i32
    return %c0_i32, %c0_i32_0 : i32, i32
  }
  func.func @transform_3(%arg0: i32) -> (i32, i32) {
    %c0_i32 = arith.constant 0 : i32
    %c0_i32_0 = arith.constant 0 : i32
    %c0_i32_1 = arith.constant 0 : i32
    return %c0_i32, %c0_i32_0 : i32, i32
  }
  func.func @transform_4(%arg0: i32) -> (i32, i32) {
    %c0_i32 = arith.constant 0 : i32
    %c0_i32_0 = arith.constant 0 : i32
    %c0_i32_1 = arith.constant 0 : i32
    return %c0_i32, %c0_i32_0 : i32, i32
  }
  func.func @transform_5(%arg0: i32) -> (i32, i32) {
    %c0_i32 = arith.constant 0 : i32
    %c0_i32_0 = arith.constant 0 : i32
    %c0_i32_1 = arith.constant 0 : i32
    return %c0_i32, %c0_i32_0 : i32, i32
  }
  func.func @transform_6(%arg0: i32) -> (i32, i32) {
    %c0_i32 = arith.constant 0 : i32
    %c0_i32_0 = arith.constant 0 : i32
    %c0_i32_1 = arith.constant 0 : i32
    return %c0_i32, %c0_i32_0 : i32, i32
  }
  func.func @transform_7(%arg0: i32) -> (i32, i32) {
    %c0_i32 = arith.constant 0 : i32
    %c0_i32_0 = arith.constant 0 : i32
    return %c0_i32, %arg0 : i32, i32
  }
}

</mosaic_0001>

<bundles_post_ra>
// kernel: tpu_custom_call.1
= control target key start
LH: loop header
LB: loop body
LE: loop exit
PB: predicated region body
PF: predicated region fallthrough
CT: control target
= control target key end

     0   :  { %s527_s0 = inlined_call_operand.vmem [shape: f32[4,16], index: 0, kind: input, shape index: {}]   ;;  %s528_s1 = inlined_call_operand.vmem [shape: bf16[32,16], index: 1, kind: input, shape index: {}]   ;;  %s529_s2 = inlined_call_operand.vmem [shape: f32[32,1], index: 2, kind: input, shape index: {}]   ;;  %s530_s3 = inlined_call_operand.vmem [shape: bf16[32,32], index: 3, kind: input, shape index: {}]   ;;  %s531_s4 = inlined_call_operand.vmem [shape: f32[32,1], index: 4, kind: input, shape index: {}]   ;;  %s532_s5 = inlined_call_operand.vmem [shape: f32[1,32], index: 5, kind: input, shape index: {}]   ;;  %s533_s6 = inlined_call_operand.<no memory space> [shape: f32[1,1], index: 6, kind: input, shape index: {}]   ;;  %s534_s7 = inlined_call_operand.hbm [shape: f32[1,4], index: 7, kind: output, shape index: {}]  }
   0x1   :  { %v12_v0 = vstv %s533_s6 }
   0x2   :  { %13 = vst [vmem:[#allocation2] sm:$0x1] %v12_v0 }
   0x3   :  { %v30_v1 = vld [vmem:[%s527_s0] sm:$0xf]  ;;  %vm70_vm0 = vcmask 130048   ;;  %v38_v4 = vld [vmem:[%s529_s2 + $0x10] sm:$0xff]  ;;  %v428_v6 = vmov 0   ;;  %v39_v8 = vld [vmem:[%s529_s2 + $0x18] sm:$0xff] }
   0x4   :  { %v386_v2 = vld [vmem:[%s528_s1] sm:$0xff]   ;;  %v31_v3 = vpack.c.bf16 %v30_v1, %v30_v1  ;;  %384 = vset.pattern.permute.xlu0 %v428_v6  ;;  %385 = vset.pattern.permute.xlu1 %v428_v6 }
   0x5   :  { %356 = vmatprep.mubr.msk.bf16.mxu0 %vm70_vm0, %v386_v2  ;;  %v36_v7 = vld [vmem:[%s529_s2] sm:$0xff]  ;;  %52 = vperm.xlu0 %384, %v38_v4  }
   0x6   :  { %379 = vmatprep.subr.msk.bf16.mxu0 %vm70_vm0, %v31_v3  ;;  %v78_v5 = vsel %vm70_vm0, %v31_v3, 0  ;;  %42 = vperm.xlu1 %385, %v36_v7  }
   0x7   :  { %355 = vmatpush3.bf16.xpose.msra.mxu0 %v78_v5 }
   0x8   :  { %14 = vsyncpa [#allocation4], 0  ;;  %v387_v9 = vld [vmem:[%s528_s1 + $0x8] sm:$0xff]   ;;  %v142_v11 = vld [vmem:[%s531_s4 + $0x18] sm:$0xff]  ;;  %vm173_vm1 = vcmask 261120   ;;  %v429_v36 = vmov 0.0   ;;  %v240_v54 = vlaneseq }
   0x9   :  { %v37_v10 = vld [vmem:[%s529_s2 + $0x8] sm:$0xff]  ;;  %57 = vperm.xlu0 %384, %v39_v8   ;;  %v141_v12 = vld [vmem:[%s531_s4 + $0x10] sm:$0xff]  ;;  %v139_v14 = vld [vmem:[%s531_s4] sm:$0xff]  ;;  %368 = vmatprep.subr.mxu0 %v429_v36  ;;  %vm430_vm2 = vmmov 0   ;;  %s431_s25 = smov [#allocation3]   ;;  %vm317_vm3 = vcmask 24576  }
   0xa   :  { %47 = vperm.xlu1 %385, %v37_v10   ;;  %v140_v13 = vld [vmem:[%s531_s4 + $0x8] sm:$0xff]  ;;  %v234_v15 = vld [vmem:[#allocation2] sm:$0x1]  ;;  %v241_v55 = vshrl.u32 %v240_v54, 7  ;;  %s325_s26 = sshll.u32 %s431_s25, 4  ;;  %s326_s26 = int_to_ptr.vmem [resolvable:$true] %s325_s26 }
   0xb   :  { %v388_v16 = vld [vmem:[%s530_s3] sm:$0xff]   ;;  %v389_v35 = vld [vmem:[%s530_s3 + $0x8] sm:$0xff]   ;;  %s406_s27 = scalar_lea.vmem %s326_s26, 16  ;;  %p411_p1 = scmp.lt.s32.totalorder %s326_s26, %s326_s26 }
   0xc   :  { %364 = vmatprep.mubr.msk.bf16.mxu1 %vm173_vm1, %v388_v16  ;;  %v233_v52 = vld [vmem:[%s532_s5] sm:$0x1]  ;;  %v242_v56 = vsub.s32 0, %v241_v55  ;;  %p407_p0 = scmp.ne.s32.totalorder %s326_s26, %s406_s27  ;;  %s410_s5 = scalar_lea.vmem %s326_s26, 32 }
   0xd   :  { %160 = vperm.xlu0 %384, %v142_v11   ;;  %p412_p2 = scmp.lt.s32.totalorder %s410_s5, %s406_s27 }
   0xe   :  { %357 = vmatmul.mubr.msk.bf16.vlgmr.msra.gmra.mxu0 %vm70_vm0, %v387_v9  ;;  %155 = vperm.xlu1 %385, %v141_v12  }
   0xf   :  { %376 = vmatprep.mubr.msk.f32.mxu0 %vm430_vm2, %v429_v36  ;;  %p413_p3 = por %p412_p2, %p411_p1 }
  0x11   :  { %150 = vperm.xlu0 %384, %v140_v13   ;;  %p414_p4 = pnand %p413_p3, %p407_p0 }
  0x12   :  { %145 = vperm.xlu1 %385, %v139_v14  }
  0x15   :  { %237 = vperm.xlu0 %384, %v234_v15  }
  0x80   :  { %v53_v17 = vpop.permute.xlu0 %52 }
  0x81   :  { %v43_v18 = vpop.permute.xlu1 %42 }
  0x84   :  { %v58_v22 = vpop.permute.xlu0 %57 }
  0x85   :  { %v48_v26 = vpop.permute.xlu1 %47 }
  0x88   :  { %v161_v37 = vpop.permute.xlu0 %160 }
  0x89   :  { %v156_v39 = vpop.permute.xlu1 %155 }
  0x8c   :  { %v151_v44 = vpop.permute.xlu0 %150 }
  0x8d   :  { %v146_v47 = vpop.permute.xlu1 %145 }
  0x90   :  { %v238_v57 = vpop.permute.xlu0 %237 }
  0x91   :  { %v243_v58 = vrot.slane %v238_v57, %v242_v56 }
  0xce   :  { %v358_v19 = vpop.f32.mrf.mxu0 }
  0xcf   :  { %v123_v20 = vadd.f32 %v358_v19, %v53_v17 }
  0xd0   :  { %v114_v21 = vpop.f32.mrf.mxu0 }
  0xd1   :  { %v115_v23 = vadd.f32 %v114_v21, %v43_v18  ;;  %390 = vtanh.f32 %v123_v20 }
  0xd2   :  { %v359_v24 = vpop.f32.mrf.mxu0 }
  0xd3   :  { %v126_v25 = vadd.f32 %v359_v24, %v58_v22 }
  0xd4   :  { %v117_v27 = vpop.f32.mrf.mxu0 }
  0xd5   :  { %392 = vtanh.f32 %v126_v25  ;;  %v118_v28 = vadd.f32 %v117_v27, %v48_v26 }
  0xd6   :  { %394 = vtanh.f32 %v115_v23 }
  0xd7   :  { %396 = vtanh.f32 %v118_v28 }
  0xde   :  { %v391_v29 = vpop.eup %390 }
  0xe2   :  { %v393_v30 = vpop.eup %392 }
  0xe3   :  { %v395_v31 = vpop.eup %394  ;;  %v138_v32 = vpack.c.bf16 %v393_v30, %v391_v29 }
  0xe4   :  { %v397_v33 = vpop.eup %396 }
  0xe5   :  { %360 = vmatprep.subr.bf16.mxu1 %v138_v32  ;;  %v137_v34 = vpack.c.bf16 %v397_v33, %v395_v31 }
  0xe6   :  { %361 = vmatpush3.bf16.msra.mxu1 %v138_v32 }
  0xe7   :  { %362 = vmatprep.subr.bf16.mxu1 %v137_v34 }
  0xea   :  { %363 = vmatpush3.bf16.msra.mxu1 %v137_v34 }
  0xed   :  { %365 = vmatmul.mubr.msk.bf16.vlgmr.msra.gmra.mxu1 %vm173_vm1, %v389_v35 }
 0x1ad   :  { %v366_v38 = vpop.f32.mrf.mxu1 }
 0x1ae   :  { %v223_v42 = vadd.f32 %v366_v38, %v156_v39 }
 0x1af   :  { %v214_v40 = vpop.f32.mrf.mxu1 }
 0x1b0   :  { %v215_v48 = vadd.f32 %v214_v40, %v146_v47 }
 0x1b1   :  { %v367_v41 = vpop.f32.mrf.mxu1 }
 0x1b2   :  { %v226_v43 = vadd.f32 %v367_v41, %v161_v37 }
 0x1b3   :  { %v217_v45 = vpop.f32.mrf.mxu1 }
 0x1b4   :  { %398 = vtanh.f32 %v226_v43  ;;  %v218_v46 = vadd.f32 %v217_v45, %v151_v44 }
 0x1b5   :  { %400 = vtanh.f32 %v223_v42 }
 0x1b6   :  { %402 = vtanh.f32 %v218_v46 }
 0x1b7   :  { %404 = vtanh.f32 %v215_v48 }
 0x1c1   :  { %v399_v49 = vpop.eup %398 }
 0x1c2   :  { %369 = vmatpush3.msra.mxu0 %v399_v49  ;;  %v401_v50 = vpop.eup %400 }
 0x1c3   :  { %370 = vmatprep.subr.mxu0 %v429_v36  ;;  %v403_v51 = vpop.eup %402 }
 0x1c4   :  { %371 = vmatpush3.msra.mxu0 %v401_v50  ;;  %v405_v53 = vpop.eup %404 }
 0x1c5   :  { %372 = vmatprep.subr.mxu0 %v429_v36 }
 0x1c6   :  { %373 = vmatpush3.msra.mxu0 %v403_v51 }
 0x1c7   :  { %374 = vmatprep.subr.mxu0 %v429_v36 }
 0x1c8   :  { %375 = vmatpush3.msra.mxu0 %v405_v53 }
 0x1c9   :  { %377 = vmatmul.mubr.msk.f32.vlgmr.msra.gmra.mxu0 %vm173_vm1, %v233_v52 }
 0x289   :  { %v313_v59 = vpop.f32.mrf.mxu0 }
 0x28a   :  { %v314_v60 = vadd.f32 %v313_v59, %v243_v58 }
 0x28b   :  { %v378_v61 = vpop.f32.mrf.mxu0 }
 0x28c   :  { %318 = vst.msk [vmem:[#allocation3] sm:$0x1] %vm317_vm3, %v314_v60 }
 0x28d   :  { %417 = shalt.err (!%p414_p4)
}
 0x28e   :  { %328 = dma.vmem_to_hbm [thread:$0]  %s326_s26, 16, %s534_s7, [#allocation4]  }
 0x28f   :  { %426 = dma.done.wait [#allocation4], 16  }
 0x290   :  { %427 = vsyncadd [#allocation4], 4294967280 }
 0x291   :  { %332 = vsyncpa [#allocation4], 1 }

</bundles_post_ra>
